<compile_context>
chip_gen: v7x
topology: tpu7x:2x2x1
jax: 0.10.0
libtpu: 0.0.40
codegen_flags: <defaults>
</compile_context>

<pallas_src>
import functools

import jax
import jax.numpy as jnp
from jax import lax
from jax.experimental import pallas as pl
from jax.experimental.pallas import tpu as pltpu

# exp(-1e4) underflows to exactly 0.0 in f32, so padded (x, y) = (_PAD_X, 1)
# contributes exactly 0 to the loss sum.
_PAD_X = 1.0e4


def _soft_margin_elem(x, y):
    # loss = log(1 + exp(-y*x)) = softplus(-y*x); numerically stable form.
    z = -y * x
    return jnp.maximum(z, 0.0) + jnp.log1p(jnp.exp(-jnp.abs(z)))


def _sml_none_kernel(x_ref, y_ref, o_ref):
    x = x_ref[...].astype(jnp.float32)
    y = y_ref[...].astype(jnp.float32)
    o_ref[...] = _soft_margin_elem(x, y).astype(o_ref.dtype)


def _sml_partial_kernel(x_ref, y_ref, o_ref, *, tile_m, n_rows, mask_rows):
    x = x_ref[...].astype(jnp.float32)
    y = y_ref[...].astype(jnp.float32)
    if mask_rows:
        # The last grid step's block may hang past the real rows; the OOB
        # region is undefined, so neutralize it *before* the transcendentals
        # ((x, y) = (_PAD_X, 1) gives exactly 0 loss).
        i = pl.program_id(0)
        row = i * tile_m + lax.broadcasted_iota(jnp.int32, x.shape, 0)
        valid = row < n_rows
        x = jnp.where(valid, x, _PAD_X)
        y = jnp.where(valid, y, 1.0)
    loss = _soft_margin_elem(x, y)
    # Per-tile partial sum, replicated into a lane-dense (8,128) block so the
    # store is an unmasked vst and the grid axis can stay "parallel" (v7x
    # megacore: each TensorCore streams its own tiles from HBM).
    part = jnp.sum(loss, keepdims=True)                      # (1, 1) f32
    o_ref[...] = jnp.broadcast_to(part, o_ref.shape).astype(jnp.float32)


def _vmem_limit_bytes():
    cap = 64 << 20                      # conservative default = v7x physical VMEM
    try:
        info = pltpu.get_tpu_info()
        cap = int(getattr(info, "vmem_capacity_bytes", cap)) or cap
    except Exception:
        pass
    # Scoped limit: at most half of physical VMEM, at least the 16 MiB default,
    # capped at 32 MiB (enough for ~5-8 MiB double-buffered streaming blocks).
    return max(16 << 20, min(32 << 20, cap // 2))


def _pick_lane_width(total):
    for lane in (1024, 512, 256, 128):
        if total % lane == 0:
            return lane, False
    return 128, True                    # pad the flat tail up to a 128 multiple


def _choose_tile_m(m_rows, lane, itemsize, n_streams, vmem_limit):
    # ~2 MiB headroom (tiny partial-sum output / internal scratch); the rest is
    # split across n_streams double-buffered operands, capped at 8 MiB/block.
    per_block = min(8 << 20, max(1 << 20, (vmem_limit - (2 << 20)) // (2 * n_streams)))
    rows = max(1, per_block // (lane * itemsize))
    sub = max(8, 32 // itemsize)        # sublane packing: 8 f32 / 16 bf16 / 32 int8
    if rows >= m_rows:
        return m_rows
    return max(sub, (rows // sub) * sub)


def soft_margin_loss(x, y, reduction: str = "mean", *, tile_m=None):
    """Pallas TPU implementation of torch.nn.SoftMarginLoss forward."""
    assert x.shape == y.shape, "input/target must have the same shape"
    assert reduction in ("mean", "sum", "none")
    orig_shape, orig_dtype = x.shape, x.dtype
    y = y.astype(orig_dtype)

    total = 1
    for d in orig_shape:
        total *= int(d)
    if total == 0:
        if reduction == "none":
            return jnp.zeros(orig_shape, orig_dtype)
        val = jnp.float32(0.0) if reduction == "sum" else jnp.float32(jnp.nan)
        return val.astype(orig_dtype)

    itemsize = jnp.dtype(orig_dtype).itemsize
    lane, need_pad = _pick_lane_width(total)

    xf = x.reshape(-1)
    yf = y.reshape(-1)
    if need_pad:
        # Padded elements contribute exactly 0 loss, so 'sum'/'mean' stay
        # exact; 'none' slices the tail off afterwards (only this rare path
        # pays the extra pad/slice HBM copies).
        padded = -(-total // lane) * lane
        xf = jnp.pad(xf, (0, padded - total), constant_values=_PAD_X)
        yf = jnp.pad(yf, (0, padded - total), constant_values=1.0)
    m_rows = xf.size // lane
    x2 = xf.reshape(m_rows, lane)        # contiguous -> free reshape
    y2 = yf.reshape(m_rows, lane)

    vmem_limit = _vmem_limit_bytes()
    n_streams = 3 if reduction == "none" else 2
    if tile_m is None:
        tile_m = _choose_tile_m(m_rows, lane, itemsize, n_streams, vmem_limit)
    tile_m = max(1, min(int(tile_m), m_rows))
    grid_m = -(-m_rows // tile_m)

    in_specs = [
        pl.BlockSpec((tile_m, lane), lambda i: (i, 0)),
        pl.BlockSpec((tile_m, lane), lambda i: (i, 0)),
    ]
    in_bytes = 2 * m_rows * lane * itemsize

    if reduction == "none":
        out = pl.pallas_call(
            _sml_none_kernel,
            out_shape=jax.ShapeDtypeStruct((m_rows, lane), orig_dtype),
            grid=(grid_m,),
            in_specs=in_specs,
            out_specs=pl.BlockSpec((tile_m, lane), lambda i: (i, 0)),
            compiler_params=pltpu.CompilerParams(
                dimension_semantics=("parallel",),
                vmem_limit_bytes=vmem_limit,
            ),
            cost_estimate=pl.CostEstimate(
                flops=5 * m_rows * lane,
                transcendentals=2 * m_rows * lane,
                bytes_accessed=in_bytes + m_rows * lane * itemsize,
            ),
        )(x2, y2)
        out = out.reshape(-1)
        if need_pad:
            out = out[:total]
        return out.reshape(orig_shape)

    # 'mean' / 'sum': one lane-dense partial-sum block per grid step; the grid
    # axis is "parallel" (v7x megacore sharding); tiny final sum outside.
    kernel = functools.partial(
        _sml_partial_kernel,
        tile_m=tile_m,
        n_rows=m_rows,
        mask_rows=(m_rows % tile_m) != 0,
    )
    partials = pl.pallas_call(
        kernel,
        out_shape=jax.ShapeDtypeStruct((grid_m * 8, 128), jnp.float32),
        grid=(grid_m,),
        in_specs=in_specs,
        out_specs=pl.BlockSpec((8, 128), lambda i: (i, 0)),
        compiler_params=pltpu.CompilerParams(
            dimension_semantics=("parallel",),
            vmem_limit_bytes=vmem_limit,
        ),
        cost_estimate=pl.CostEstimate(
            flops=6 * m_rows * lane,
            transcendentals=2 * m_rows * lane,
            bytes_accessed=in_bytes + grid_m * 8 * 128 * 4,
        ),
    )(x2, y2)
    totals = partials.reshape(grid_m, 8, 128)[:, 0, 0]       # one copy per tile
    result = jnp.sum(totals)
    if reduction == "mean":
        result = result / jnp.float32(total)
    return result.astype(orig_dtype)


def _reference(x, y, reduction):
    xf = x.astype(jnp.float32)
    yf = y.astype(jnp.float32)
    z = -yf * xf
    loss = jnp.maximum(z, 0.0) + jnp.log1p(jnp.exp(-jnp.abs(z)))
    if reduction == "none":
        return loss.astype(x.dtype)
    r = jnp.sum(loss) if reduction == "sum" else jnp.mean(loss)
    return r.astype(x.dtype)


if __name__ == "__main__":
    key = jax.random.PRNGKey(0)
    k1, k2, k3, k4, k5, k6 = jax.random.split(key, 6)
    ok = True

    def check(x, y, red, atol=1e-4, rtol=1e-4, **kw):
        out = jax.block_until_ready(soft_margin_loss(x, y, reduction=red, **kw))
        ref = _reference(x, y, red)
        return bool(jnp.allclose(jnp.asarray(out, jnp.float32),
                                 jnp.asarray(ref, jnp.float32),
                                 atol=atol, rtol=rtol))

    # 1) Small 2-D case (batch=8, classes=32): total=256 -> lane-dense (1, 256).
    x = jax.random.normal(k1, (8, 32), dtype=jnp.float32)
    y = jnp.where(jax.random.uniform(k2, (8, 32)) > 0.5, 1.0, -1.0).astype(jnp.float32)
    for red in ("mean", "sum", "none"):
        ok = ok and check(x, y, red)

    # 2) Multi-tile + clipped last row-block: total=12288 -> (12, 1024),
    #    tile_m=8 -> grid of 2, last block masked in the reduce path.
    x2 = jax.random.normal(k3, (96, 128), dtype=jnp.float32)
    y2 = jnp.where(jax.random.uniform(k4, (96, 128)) > 0.5, 1.0, -1.0).astype(jnp.float32)
    for red in ("mean", "sum", "none"):
        ok = ok and check(x2, y2, red, tile_m=8)

    # 3) Remainder tail (total=63, not a multiple of 128) -> pad path.
    x3 = jax.random.normal(k5, (7, 9), dtype=jnp.float32)
    y3 = jnp.where(jax.random.uniform(k6, (7, 9)) > 0.5, 1.0, -1.0).astype(jnp.float32)
    for red in ("mean", "sum", "none"):
        ok = ok and check(x3, y3, red)

    # 4) bf16 input path (halves HBM bytes; arithmetic stays f32 in-kernel).
    xb, yb = x.astype(jnp.bfloat16), y.astype(jnp.bfloat16)
    ok = ok and check(xb, yb, "mean", atol=2e-2, rtol=2e-2)

    print("KERNEL_OK" if ok else "KERNEL_MISMATCH")
</pallas_src>

<mosaic_0001>
module attributes {stable_mosaic.version = 11 : i64} {
  func.func @_sml_partial_kernel(%arg0: i32, %arg1: memref<1x256xf32, #tpu.memory_space<vmem>>, %arg2: memref<1x256xf32, #tpu.memory_space<vmem>>, %arg3: memref<8x128xf32, #tpu.memory_space<vmem>>) attributes {dimension_semantics = [#tpu.dimension_semantics<parallel>], iteration_bounds = array<i64: 1>, scalar_prefetch = 0 : i64, scratch_operands = 0 : i64, tpu.core_type = #tpu.core_type<tc>, window_params = [{transform_indices = @transform_0, window_bounds = array<i64: 1, 256>}, {transform_indices = @transform_1, window_bounds = array<i64: 1, 256>}, {transform_indices = @transform_2, window_bounds = array<i64: 8, 128>}]} {
    %c0 = arith.constant 0 : index
    %c0_0 = arith.constant 0 : index
    %0 = vector.load %arg1[%c0, %c0_0] : memref<1x256xf32, #tpu.memory_space<vmem>>, vector<1x256xf32>
    %c0_1 = arith.constant 0 : index
    %c0_2 = arith.constant 0 : index
    %1 = vector.load %arg2[%c0_1, %c0_2] : memref<1x256xf32, #tpu.memory_space<vmem>>, vector<1x256xf32>
    %cst = arith.constant 0.000000e+00 : f32
    %2 = vector.broadcast %cst : f32 to vector<1x256xf32>
    %3 = arith.subf %2, %1 : vector<1x256xf32>
    %4 = arith.mulf %3, %0 : vector<1x256xf32>
    %cst_3 = arith.constant 0.000000e+00 : f32
    %5 = vector.broadcast %cst_3 : f32 to vector<1x256xf32>
    %6 = arith.maximumf %4, %5 : vector<1x256xf32>
    %7 = math.absf %4 : vector<1x256xf32>
    %cst_4 = arith.constant 0.000000e+00 : f32
    %8 = vector.broadcast %cst_4 : f32 to vector<1x256xf32>
    %9 = arith.subf %8, %7 : vector<1x256xf32>
    %10 = math.exp %9 : vector<1x256xf32>
    %11 = math.log1p %10 : vector<1x256xf32>
    %12 = arith.addf %6, %11 : vector<1x256xf32>
    %13 = vector.shape_cast %12 : vector<1x256xf32> to vector<1x1x256xf32>
    %cst_5 = arith.constant dense<0.000000e+00> : vector<1xf32>
    %14 = vector.multi_reduction <add>, %13, %cst_5 [1, 2] : vector<1x1x256xf32> to vector<1xf32>
    %15 = vector.shape_cast %14 : vector<1xf32> to vector<1x1x1xf32>
    %16 = vector.extract %15[0, 0, 0] : f32 from vector<1x1x1xf32>
    %17 = vector.broadcast %16 : f32 to vector<1x1xf32>
    %18 = vector.shape_cast %17 : vector<1x1xf32> to vector<1x1xf32>
    %19 = vector.broadcast %18 : vector<1x1xf32> to vector<8x128xf32>
    %c0_6 = arith.constant 0 : index
    %c0_7 = arith.constant 0 : index
    %20 = vector.load %arg3[%c0_6, %c0_7] : memref<8x128xf32, #tpu.memory_space<vmem>>, vector<8x128xf32>
    tpu.vector_store %arg3[%c0_6, %c0_7], %19 {strides = array<i32>} : memref<8x128xf32, #tpu.memory_space<vmem>>, vector<8x128xf32>,
    return
  }
  func.func @transform_0(%arg0: i32) -> (i32, i32) {
    %c0_i32 = arith.constant 0 : i32
    %c0_i32_0 = arith.constant 0 : i32
    return %arg0, %c0_i32 : i32, i32
  }
  func.func @transform_1(%arg0: i32) -> (i32, i32) {
    %c0_i32 = arith.constant 0 : i32
    %c0_i32_0 = arith.constant 0 : i32
    return %arg0, %c0_i32 : i32, i32
  }
  func.func @transform_2(%arg0: i32) -> (i32, i32) {
    %c0_i32 = arith.constant 0 : i32
    %c0_i32_0 = arith.constant 0 : i32
    return %arg0, %c0_i32 : i32, i32
  }
}

</mosaic_0001>

<bundles_post_ra>
// kernel: tpu_custom_call.1
= control target key start
LH: loop header
LB: loop body
LE: loop exit
PB: predicated region body
PF: predicated region fallthrough
CT: control target
= control target key end

     0   :  { %7 = vsyncpa [#allocation3], 0  ;;  %s184_s0 = inlined_call_operand.hbm [shape: f32[1,256], index: 0, kind: input, shape index: {}]   ;;  %s185_s1 = inlined_call_operand.vmem [shape: f32[1,256], index: 1, kind: input, shape index: {}]   ;;  %s186_s2 = inlined_call_operand.hbm [shape: f32[8,128], index: 2, kind: output, shape index: {}]  }
   0x1   :  { %8 = vsyncpa [#allocation4], 0  ;;  %s140_s9 = smov [#allocation2]   ;;  %s92_s13 = scalar_lea.hbm %s184_s0, 32 }
   0x2   :  { %s15_s10 = sshll.u32 %s140_s9, 4  ;;  %p93_p0 = scmp.ne.s32.totalorder %s184_s0, %s92_s13  ;;  %s16_s10 = int_to_ptr.vmem [resolvable:$true] %s15_s10 }
   0x3   :  { %p96_p1 = scmp.lt.u32.totalorder %s92_s13, %s184_s0 }
   0x5   :  { %p98_p2 = pnand %p96_p1, %p93_p0 }
   0x7   :  { %101 = shalt.err (!%p98_p2)
}
   0x8   :  { %s102_s18 = scalar_lea.vmem %s16_s10, 32  ;;  %p107_p4 = scmp.lt.s32.totalorder %s16_s10, %s16_s10 }
   0x9   :  { %p103_p3 = scmp.ne.s32.totalorder %s16_s10, %s102_s18  ;;  %p108_p5 = scmp.lt.s32.totalorder %s102_s18, %s102_s18 }
   0xb   :  { %p109_p6 = por %p108_p5, %p107_p4 }
   0xd   :  { %p110_p7 = pnand %p109_p6, %p103_p3 }
   0xf   :  { %113 = shalt.err (!%p110_p7)
}
  0x10   :  { %18 = dma.hbm_to_vmem [thread:$0]  %s184_s0, 32, %s16_s10, [#allocation3]  }
  0x11   :  { %136 = dma.done.wait [#allocation3], 32  }
  0x12   :  { %137 = vsyncadd [#allocation3], 4294967264  ;;  %v24_v0 = vld [vmem:[#allocation2] sm:$0x3]  ;;  %v44_v10 = vlaneseq  ;;  %vm54_vm1 = vcmask 1040384   ;;  %s141_s0 = smov [#allocation5]  }
  0x13   :  { %v25_v1 = vld [vmem:[%s185_s1] sm:$0x3]  ;;  %s75_s1 = sshll.u32 %s141_s0, 4  ;;  %s76_s1 = int_to_ptr.vmem [resolvable:$true] %s75_s1 }
  0x14   :  { %v26_v2 = vsub.f32 0.0, %v25_v1  ;;  %v45_v13 = vshrl.u32 %v44_v10, 7  ;;  %s114_s24 = scalar_lea.vmem %s76_s1, 128  ;;  %p119_p9 = scmp.lt.s32.totalorder %s76_s1, %s76_s1 }
  0x15   :  { %p115_p8 = scmp.ne.s32.totalorder %s76_s1, %s114_s24  ;;  %p120_p10 = scmp.lt.s32.totalorder %s114_s24, %s114_s24 }
  0x16   :  { %v27_v3 = vmul.f32 %v26_v2, %v24_v0  ;;  %v46_v18 = vsub.s32 0, %v45_v13  ;;  %v50_v19 = vsub.s32 1, %v45_v13 }
  0x17   :  { %p121_p11 = por %p120_p10, %p119_p9 }
  0x18   :  { %v29_v4 = vand.u32 2147483647, %v27_v3  ;;  %v28_v16 = vmax.f32 %v27_v3, 0.0 }
  0x19   :  { %p122_p12 = pnand %p121_p11, %p115_p8 }
  0x1a   :  { %v30_v5 = vsub.f32 0.0, %v29_v4 }
  0x1c   :  { %v31_v6 = vmul.f32 1.442695, %v30_v5 }
  0x1e   :  { %88 = vpow2.f32 %v31_v6 }
  0x28   :  { %v89_v7 = vpop.eup %88 }
  0x29   :  { %v33_v8 = vadd.f32 1.0, %v89_v7  ;;  %v36_v9 = vmul.f32 -0.5, %v89_v7  ;;  %v39_v12 = vand.u32 2147483647, %v89_v7 }
  0x2b   :  { %90 = vlog2.f32 %v33_v8  ;;  %v37_v11 = vadd.f32 1.0, %v36_v9  ;;  %vm40_vm0 = vcmp.lt.f32.partialorder %v39_v12, 0.0004427343 }
  0x2d   :  { %v38_v14 = vmul.f32 %v89_v7, %v37_v11 }
  0x35   :  { %v91_v15 = vpop.eup %90 }
  0x36   :  { %v35_v17 = vmul.f32 0.6931472, %v91_v15 }
  0x38   :  { %v41_v20 = vsel %vm40_vm0, %v38_v14, %v35_v17 }
  0x39   :  { %v42_v21 = vadd.f32 %v41_v20, %v28_v16 }
  0x3b   :  { %v47_v22 = vrot.slane %v42_v21, %v46_v18  ;;  %v51_v23 = vrot.slane %v42_v21, %v50_v19 }
  0x3d   :  { %v55_v24 = vsel %vm54_vm1, %v47_v22, 0.0  ;;  %v56_v25 = vsel %vm54_vm1, %v51_v23, 0.0 }
  0x3e   :  { %v57_v26 = vadd.f32 %v56_v25, %v55_v24 }
  0x40   :  { %58 = vadd.xlane.f32.xlu0 %v57_v26 }
  0xcd   :  { %v59_v27 = vpop.xlane.xlu0 %58 }
  0xce   :  { %v60_v28 = vrot.slane %v59_v27, 4 }
  0xd0   :  { %v61_v29 = vadd.f32 %v60_v28, %v59_v27 }
  0xd2   :  { %v62_v30 = vrot.slane %v61_v29, 2 }
  0xd4   :  { %v63_v31 = vadd.f32 %v62_v30, %v61_v29 }
  0xd6   :  { %v64_v32 = vrot.slane %v63_v31, 1 }
  0xd8   :  { %v65_v33 = vadd.f32 %v64_v32, %v63_v31 }
  0xda   :  { %84 = vpush %v65_v33 }
 0x10b   :  { %s85_s23 = spop %84 }
 0x10c   :  { %v67_v34 = vstv %s85_s23 }
 0x10d   :  { %68 = vst [vmem:[#allocation5] sm:$0xff] %v67_v34 }
 0x10e   :  { %125 = shalt.err (!%p122_p12)
}
 0x10f   :  { %s126_s27 = scalar_lea.hbm %s186_s2, 128 }
 0x110   :  { %p127_p13 = scmp.ne.s32.totalorder %s186_s2, %s126_s27  ;;  %p130_p0 = scmp.lt.u32.totalorder %s126_s27, %s186_s2 }
 0x112   :  { %p132_p1 = pnand %p130_p0, %p127_p13 }
 0x114   :  { %135 = shalt.err (!%p132_p1)
}
 0x115   :  { %78 = dma.vmem_to_hbm [thread:$0]  %s76_s1, 128, %s186_s2, [#allocation4]  }
 0x116   :  { %138 = dma.done.wait [#allocation4], 128  }
 0x117   :  { %139 = vsyncadd [#allocation4], 4294967168 }
 0x118   :  { %82 = vsyncpa [#allocation3], 1 }
 0x119   :  { %83 = vsyncpa [#allocation4], 1 }

</bundles_post_ra>
